<compile_context>
chip_gen: v5e
topology: v5e:2x2
jax: 0.10.0
libtpu: 0.0.40
codegen_flags: <defaults>
</compile_context>

<pallas_src>
import functools

import jax
import jax.numpy as jnp
from jax import lax
from jax.experimental import pallas as pl
from jax.experimental.pallas import tpu as pltpu


def _round_up(a, b):
    return (a + b - 1) // b * b


def _conv_relu_pool_kernel(p_ref, w_ref, b_ref, o_ref, *, kh, kw, stride, Wd, L_out):
    """Fused Conv2d(stride) -> MaxPool2d(2) -> bias -> ReLU on one lane block.

    p_ref: (D*D, C_in_pad, L_in)      bf16 de-interleaved input planes
                                      plane index = row_phase*D + col_phase,
                                      lane = (img_in_group, plane_row, plane_col)
    w_ref: (kh*kw, co_tile, C_in_pad) bf16 per-tap weight slices
    b_ref: (co_tile, 1)               f32 bias
    o_ref: (co_tile, L_out)           pooled output tile (lane-dense)
    """
    D = 2 * stride
    plane_cache = {}

    def plane(idx):
        # cache whole-plane loads at trace time (reused across taps/windows)
        if idx not in plane_cache:
            plane_cache[idx] = p_ref[idx]          # (C_in_pad, L_in) bf16
        return plane_cache[idx]

    window_max = None
    for dr in range(2):                            # 2x2 pool window rows
        for dc in range(2):                        # 2x2 pool window cols
            acc = None
            for kr in range(kh):                   # conv taps
                for kc in range(kw):
                    u = dr * stride + kr           # row offset from 2*stride*hp
                    v = dc * stride + kc           # col offset from 2*stride*wp
                    p_idx = (u % D) * D + (v % D)
                    delta = (u // D) * Wd + (v // D)
                    # static lane-offset slice of the de-interleaved plane
                    xs = plane(p_idx)[:, delta:delta + L_out]     # (C_in_pad, L_out)
                    wt = w_ref[kr * kw + kc]                      # (co_tile, C_in_pad)
                    t = jnp.dot(wt, xs, preferred_element_type=jnp.float32)  # MXU
                    acc = t if acc is None else acc + t
            window_max = acc if window_max is None else jnp.maximum(window_max, acc)
    # Pool first, then a single bias add + ReLU (exact: max(x+b)=max(x)+b, ReLU monotone)
    y = jnp.maximum(window_max + b_ref[...], 0.0)
    o_ref[...] = y.astype(o_ref.dtype)


def conv_block_forward(x_nchw, weight, bias, kernel_size, stride, *, lane_target=512):
    """ConvBlock forward: Conv2d(C_in, C_out, k, stride) -> ReLU -> MaxPool2d(2)."""
    N, C_in, H, W = x_nchw.shape
    C_out = weight.shape[0]
    kh = kw = int(kernel_size)
    s = int(stride)
    H_out = (H - kh) // s + 1
    W_out = (W - kw) // s + 1
    if H_out < 2 or W_out < 2:
        raise ValueError("Conv output too small for MaxPool2d(2): "
                         f"H_out={H_out}, W_out={W_out}")
    Hp, Wp = H_out // 2, W_out // 2                # MaxPool2d(2) floors

    # De-interleave factor: one pooled-grid step spans 2*stride input pixels.
    D = 2 * s
    D2 = D * D
    Hd = -(-H // D)                                # plane grid rows  = ceil(H/D)
    Wd = -(-W // D)                                # plane grid cols  = ceil(W/D)
    L_img = Hd * Wd                                # lanes per image

    C_in_pad = _round_up(C_in, 16)                 # bf16 sublane packing

    # Images per lane block: target ~lane_target lanes/step (fewer, fatter grid
    # steps), capped so the per-step de-interleaved input stays well in VMEM.
    per_img_bytes = D2 * C_in_pad * L_img * 2      # bf16
    g_cap = max(1, (8 * 1024 * 1024) // max(per_img_bytes, 1))
    G = max(1, min(N, -(-lane_target // L_img), g_cap))
    NB = -(-N // G)                                # number of lane blocks
    N_pad = NB * G

    L_out = _round_up(G * L_img, 128)              # lane-dense output block
    a_max = (s + kh - 1) // D                      # max plane-row shift
    b_max = (s + kw - 1) // D                      # max plane-col shift
    delta_max = a_max * Wd + b_max
    L_in = _round_up(L_out + delta_max, 128)       # input block incl. shift slack

    # C_out tiling guard: keep 4 f32 accumulators (co_tile, L_out) vreg-friendly.
    co_cap = max(16, (8192 // max(L_out, 1)) // 16 * 16)
    co_tile = min(_round_up(C_out, 16), co_cap)
    C_out_pad = _round_up(C_out, co_tile)
    n_co = C_out_pad // co_tile

    # ---- single 1x-read relayout: (2s x 2s) de-interleave into "planes" ----
    xpad = jnp.pad(x_nchw, ((0, 0), (0, 0), (0, D * Hd - H), (0, D * Wd - W)))
    xr = xpad.reshape(N, C_in, Hd, D, Wd, D)
    planes = jnp.transpose(xr, (3, 5, 1, 0, 2, 4))         # (D, D, C_in, N, Hd, Wd)
    planes = planes.reshape(D2, C_in, N, L_img)
    planes = jnp.pad(planes, ((0, 0), (0, 0), (0, N_pad - N), (0, 0)))
    planes = planes.reshape(D2, C_in, NB, G * L_img)
    planes = jnp.pad(planes, ((0, 0), (0, C_in_pad - C_in), (0, 0),
                              (0, L_in - G * L_img)))
    planes = planes.reshape(D2, C_in_pad, NB * L_in).astype(jnp.bfloat16)

    # Per-tap weight slices (kh*kw, C_out_pad, C_in_pad) and bias column.
    w_taps = jnp.transpose(weight, (2, 3, 0, 1)).reshape(kh * kw, C_out, C_in)
    w_taps = jnp.pad(w_taps, ((0, 0), (0, C_out_pad - C_out), (0, C_in_pad - C_in)))
    w_taps = w_taps.astype(jnp.bfloat16)
    b_col = jnp.pad(bias, (0, C_out_pad - C_out)).reshape(C_out_pad, 1)
    b_col = b_col.astype(jnp.float32)

    # Generation-aware VMEM limit: ~96 MiB on 128 MiB parts, ~48 MiB on v7x.
    try:
        cap = int(pltpu.get_tpu_info().vmem_capacity_bytes)
        vmem_limit = max(32 * 1024 * 1024, min(96 * 1024 * 1024, (cap * 3) // 4))
    except Exception:  # pragma: no cover - conservative fallback
        vmem_limit = 48 * 1024 * 1024

    out = pl.pallas_call(
        functools.partial(_conv_relu_pool_kernel, kh=kh, kw=kw, stride=s,
                          Wd=Wd, L_out=L_out),
        out_shape=jax.ShapeDtypeStruct((C_out_pad, NB * L_out), x_nchw.dtype),
        grid_spec=pltpu.PrefetchScalarGridSpec(
            num_scalar_prefetch=0,
            grid=(NB, n_co),
            in_specs=[
                pl.BlockSpec((D2, C_in_pad, L_in), lambda t, c: (0, 0, t)),
                pl.BlockSpec((kh * kw, co_tile, C_in_pad), lambda t, c: (0, c, 0)),
                pl.BlockSpec((co_tile, 1), lambda t, c: (c, 0)),
            ],
            out_specs=pl.BlockSpec((co_tile, L_out), lambda t, c: (c, t)),
        ),
        compiler_params=pltpu.CompilerParams(
            dimension_semantics=("parallel", "parallel"),
            vmem_limit_bytes=int(vmem_limit)),
    )(planes, w_taps, b_col)

    # Trim padding; lanes are already (img, pooled_row, pooled_col) ordered, so
    # only a reshape + small transpose on the pooled output remains.
    out = out.reshape(C_out_pad, NB, L_out)[:, :, :G * L_img]
    out = out.reshape(C_out_pad, N_pad, Hd, Wd)[:C_out, :N, :Hp, :Wp]
    return jnp.transpose(out, (1, 0, 2, 3))                 # (N, C_out, Hp, Wp)


def _reference_forward(x, weight, bias, stride):
    """Plain-JAX reference (numerical check only)."""
    y = lax.conv_general_dilated(
        x, weight, (stride, stride), "VALID",
        dimension_numbers=("NCHW", "OIHW", "NCHW"))
    y = y + bias.reshape(1, -1, 1, 1)
    y = jnp.maximum(y, 0.0)
    y = lax.reduce_window(y, -jnp.inf, lax.max,
                          (1, 1, 2, 2), (1, 1, 2, 2), "VALID")
    return y


if __name__ == "__main__":
    # ConvBlock(C_in=4, C_out=8, kernel_size=3, stride=1) on x: (2, 4, 16, 16)
    N, C_in, H, W = 2, 4, 16, 16
    C_out, kernel_size, stride = 8, 3, 1

    key = jax.random.PRNGKey(0)
    kx, kw_, kb = jax.random.split(key, 3)

    x = jax.random.normal(kx, (N, C_in, H, W), dtype=jnp.float32)

    # deterministic Conv2d-style init (uniform in +/- 1/sqrt(fan_in))
    fan_in = C_in * kernel_size * kernel_size
    bound = 1.0 / (fan_in ** 0.5)
    weight = jax.random.uniform(kw_, (C_out, C_in, kernel_size, kernel_size),
                                dtype=jnp.float32, minval=-bound, maxval=bound)
    bias = jax.random.uniform(kb, (C_out,), dtype=jnp.float32,
                              minval=-bound, maxval=bound)

    out = jax.block_until_ready(
        conv_block_forward(x, weight, bias, kernel_size, stride))
    ref = jax.block_until_ready(_reference_forward(x, weight, bias, stride))

    assert out.shape == ref.shape, (out.shape, ref.shape)
    # bf16 MXU inputs with f32 accumulation -> bf16-appropriate tolerance
    assert jnp.allclose(out, ref, atol=5e-2, rtol=5e-2), "mismatch vs reference"

    print("KERNEL_OK")
</pallas_src>

<mosaic_0001>
module attributes {stable_mosaic.version = 11 : i64} {
  func.func @_conv_relu_pool_kernel(%arg0: i32, %arg1: i32, %arg2: memref<4x16x256xbf16, #tpu.memory_space<vmem>>, %arg3: memref<9x16x16xbf16, #tpu.memory_space<vmem>>, %arg4: memref<16x1xf32, #tpu.memory_space<vmem>>, %arg5: memref<16x128xf32, #tpu.memory_space<vmem>>) attributes {dimension_semantics = [#tpu.dimension_semantics<parallel>, #tpu.dimension_semantics<parallel>], iteration_bounds = array<i64: 1, 1>, scalar_prefetch = 0 : i64, scratch_operands = 0 : i64, tpu.core_type = #tpu.core_type<tc>, window_params = [{transform_indices = @transform_0, window_bounds = array<i64: 4, 16, 256>}, {transform_indices = @transform_1, window_bounds = array<i64: 9, 16, 16>}, {transform_indices = @transform_2, window_bounds = array<i64: 16, 1>}, {transform_indices = @transform_3, window_bounds = array<i64: 16, 128>}]} {
    %c0 = arith.constant 0 : index
    %c0_0 = arith.constant 0 : index
    %c0_1 = arith.constant 0 : index
    %0 = vector.load %arg2[%c0, %c0_0, %c0_1] : memref<4x16x256xbf16, #tpu.memory_space<vmem>>, vector<1x16x256xbf16>
    %1 = vector.shape_cast %0 : vector<1x16x256xbf16> to vector<16x256xbf16>
    %2 = vector.extract_strided_slice %1 {offsets = [0, 0], sizes = [16, 128], strides = [1, 1]} : vector<16x256xbf16> to vector<16x128xbf16>
    %c0_2 = arith.constant 0 : index
    %c0_3 = arith.constant 0 : index
    %c0_4 = arith.constant 0 : index
    %3 = vector.load %arg3[%c0_2, %c0_3, %c0_4] : memref<9x16x16xbf16, #tpu.memory_space<vmem>>, vector<1x16x16xbf16>
    %4 = vector.shape_cast %3 : vector<1x16x16xbf16> to vector<16x16xbf16>
    %cst = arith.constant dense<0.000000e+00> : vector<16x128xf32>
    %5 = tpu.matmul %4, %2, %cst {dimension_numbers = #tpu.dot_dimension_numbers<[1], [0], [0], [1], [0, 0, 1, 1], [], []>} : vector<16x16xbf16>, vector<16x128xbf16>, vector<16x128xf32> -> vector<16x128xf32>
    %c1 = arith.constant 1 : index
    %c0_5 = arith.constant 0 : index
    %c0_6 = arith.constant 0 : index
    %6 = vector.load %arg2[%c1, %c0_5, %c0_6] : memref<4x16x256xbf16, #tpu.memory_space<vmem>>, vector<1x16x256xbf16>
    %7 = vector.shape_cast %6 : vector<1x16x256xbf16> to vector<16x256xbf16>
    %8 = vector.extract_strided_slice %7 {offsets = [0, 0], sizes = [16, 128], strides = [1, 1]} : vector<16x256xbf16> to vector<16x128xbf16>
    %c1_7 = arith.constant 1 : index
    %c0_8 = arith.constant 0 : index
    %c0_9 = arith.constant 0 : index
    %9 = vector.load %arg3[%c1_7, %c0_8, %c0_9] : memref<9x16x16xbf16, #tpu.memory_space<vmem>>, vector<1x16x16xbf16>
    %10 = vector.shape_cast %9 : vector<1x16x16xbf16> to vector<16x16xbf16>
    %cst_10 = arith.constant dense<0.000000e+00> : vector<16x128xf32>
    %11 = tpu.matmul %10, %8, %cst_10 {dimension_numbers = #tpu.dot_dimension_numbers<[1], [0], [0], [1], [0, 0, 1, 1], [], []>} : vector<16x16xbf16>, vector<16x128xbf16>, vector<16x128xf32> -> vector<16x128xf32>
    %12 = arith.addf %5, %11 : vector<16x128xf32>
    %13 = vector.extract_strided_slice %1 {offsets = [0, 1], sizes = [16, 128], strides = [1, 1]} : vector<16x256xbf16> to vector<16x128xbf16>
    %c2 = arith.constant 2 : index
    %c0_11 = arith.constant 0 : index
    %c0_12 = arith.constant 0 : index
    %14 = vector.load %arg3[%c2, %c0_11, %c0_12] : memref<9x16x16xbf16, #tpu.memory_space<vmem>>, vector<1x16x16xbf16>
    %15 = vector.shape_cast %14 : vector<1x16x16xbf16> to vector<16x16xbf16>
    %cst_13 = arith.constant dense<0.000000e+00> : vector<16x128xf32>
    %16 = tpu.matmul %15, %13, %cst_13 {dimension_numbers = #tpu.dot_dimension_numbers<[1], [0], [0], [1], [0, 0, 1, 1], [], []>} : vector<16x16xbf16>, vector<16x128xbf16>, vector<16x128xf32> -> vector<16x128xf32>
    %17 = arith.addf %12, %16 : vector<16x128xf32>
    %c2_14 = arith.constant 2 : index
    %c0_15 = arith.constant 0 : index
    %c0_16 = arith.constant 0 : index
    %18 = vector.load %arg2[%c2_14, %c0_15, %c0_16] : memref<4x16x256xbf16, #tpu.memory_space<vmem>>, vector<1x16x256xbf16>
    %19 = vector.shape_cast %18 : vector<1x16x256xbf16> to vector<16x256xbf16>
    %20 = vector.extract_strided_slice %19 {offsets = [0, 0], sizes = [16, 128], strides = [1, 1]} : vector<16x256xbf16> to vector<16x128xbf16>
    %c3 = arith.constant 3 : index
    %c0_17 = arith.constant 0 : index
    %c0_18 = arith.constant 0 : index
    %21 = vector.load %arg3[%c3, %c0_17, %c0_18] : memref<9x16x16xbf16, #tpu.memory_space<vmem>>, vector<1x16x16xbf16>
    %22 = vector.shape_cast %21 : vector<1x16x16xbf16> to vector<16x16xbf16>
    %cst_19 = arith.constant dense<0.000000e+00> : vector<16x128xf32>
    %23 = tpu.matmul %22, %20, %cst_19 {dimension_numbers = #tpu.dot_dimension_numbers<[1], [0], [0], [1], [0, 0, 1, 1], [], []>} : vector<16x16xbf16>, vector<16x128xbf16>, vector<16x128xf32> -> vector<16x128xf32>
    %24 = arith.addf %17, %23 : vector<16x128xf32>
    %c3_20 = arith.constant 3 : index
    %c0_21 = arith.constant 0 : index
    %c0_22 = arith.constant 0 : index
    %25 = vector.load %arg2[%c3_20, %c0_21, %c0_22] : memref<4x16x256xbf16, #tpu.memory_space<vmem>>, vector<1x16x256xbf16>
    %26 = vector.shape_cast %25 : vector<1x16x256xbf16> to vector<16x256xbf16>
    %27 = vector.extract_strided_slice %26 {offsets = [0, 0], sizes = [16, 128], strides = [1, 1]} : vector<16x256xbf16> to vector<16x128xbf16>
    %c4 = arith.constant 4 : index
    %c0_23 = arith.constant 0 : index
    %c0_24 = arith.constant 0 : index
    %28 = vector.load %arg3[%c4, %c0_23, %c0_24] : memref<9x16x16xbf16, #tpu.memory_space<vmem>>, vector<1x16x16xbf16>
    %29 = vector.shape_cast %28 : vector<1x16x16xbf16> to vector<16x16xbf16>
    %cst_25 = arith.constant dense<0.000000e+00> : vector<16x128xf32>
    %30 = tpu.matmul %29, %27, %cst_25 {dimension_numbers = #tpu.dot_dimension_numbers<[1], [0], [0], [1], [0, 0, 1, 1], [], []>} : vector<16x16xbf16>, vector<16x128xbf16>, vector<16x128xf32> -> vector<16x128xf32>
    %31 = arith.addf %24, %30 : vector<16x128xf32>
    %32 = vector.extract_strided_slice %19 {offsets = [0, 1], sizes = [16, 128], strides = [1, 1]} : vector<16x256xbf16> to vector<16x128xbf16>
    %c5 = arith.constant 5 : index
    %c0_26 = arith.constant 0 : index
    %c0_27 = arith.constant 0 : index
    %33 = vector.load %arg3[%c5, %c0_26, %c0_27] : memref<9x16x16xbf16, #tpu.memory_space<vmem>>, vector<1x16x16xbf16>
    %34 = vector.shape_cast %33 : vector<1x16x16xbf16> to vector<16x16xbf16>
    %cst_28 = arith.constant dense<0.000000e+00> : vector<16x128xf32>
    %35 = tpu.matmul %34, %32, %cst_28 {dimension_numbers = #tpu.dot_dimension_numbers<[1], [0], [0], [1], [0, 0, 1, 1], [], []>} : vector<16x16xbf16>, vector<16x128xbf16>, vector<16x128xf32> -> vector<16x128xf32>
    %36 = arith.addf %31, %35 : vector<16x128xf32>
    %37 = vector.extract_strided_slice %1 {offsets = [0, 8], sizes = [16, 128], strides = [1, 1]} : vector<16x256xbf16> to vector<16x128xbf16>
    %c6 = arith.constant 6 : index
    %c0_29 = arith.constant 0 : index
    %c0_30 = arith.constant 0 : index
    %38 = vector.load %arg3[%c6, %c0_29, %c0_30] : memref<9x16x16xbf16, #tpu.memory_space<vmem>>, vector<1x16x16xbf16>
    %39 = vector.shape_cast %38 : vector<1x16x16xbf16> to vector<16x16xbf16>
    %cst_31 = arith.constant dense<0.000000e+00> : vector<16x128xf32>
    %40 = tpu.matmul %39, %37, %cst_31 {dimension_numbers = #tpu.dot_dimension_numbers<[1], [0], [0], [1], [0, 0, 1, 1], [], []>} : vector<16x16xbf16>, vector<16x128xbf16>, vector<16x128xf32> -> vector<16x128xf32>
    %41 = arith.addf %36, %40 : vector<16x128xf32>
    %42 = vector.extract_strided_slice %7 {offsets = [0, 8], sizes = [16, 128], strides = [1, 1]} : vector<16x256xbf16> to vector<16x128xbf16>
    %c7 = arith.constant 7 : index
    %c0_32 = arith.constant 0 : index
    %c0_33 = arith.constant 0 : index
    %43 = vector.load %arg3[%c7, %c0_32, %c0_33] : memref<9x16x16xbf16, #tpu.memory_space<vmem>>, vector<1x16x16xbf16>
    %44 = vector.shape_cast %43 : vector<1x16x16xbf16> to vector<16x16xbf16>
    %cst_34 = arith.constant dense<0.000000e+00> : vector<16x128xf32>
    %45 = tpu.matmul %44, %42, %cst_34 {dimension_numbers = #tpu.dot_dimension_numbers<[1], [0], [0], [1], [0, 0, 1, 1], [], []>} : vector<16x16xbf16>, vector<16x128xbf16>, vector<16x128xf32> -> vector<16x128xf32>
    %46 = arith.addf %41, %45 : vector<16x128xf32>
    %47 = vector.extract_strided_slice %1 {offsets = [0, 9], sizes = [16, 128], strides = [1, 1]} : vector<16x256xbf16> to vector<16x128xbf16>
    %c8 = arith.constant 8 : index
    %c0_35 = arith.constant 0 : index
    %c0_36 = arith.constant 0 : index
    %48 = vector.load %arg3[%c8, %c0_35, %c0_36] : memref<9x16x16xbf16, #tpu.memory_space<vmem>>, vector<1x16x16xbf16>
    %49 = vector.shape_cast %48 : vector<1x16x16xbf16> to vector<16x16xbf16>
    %cst_37 = arith.constant dense<0.000000e+00> : vector<16x128xf32>
    %50 = tpu.matmul %49, %47, %cst_37 {dimension_numbers = #tpu.dot_dimension_numbers<[1], [0], [0], [1], [0, 0, 1, 1], [], []>} : vector<16x16xbf16>, vector<16x128xbf16>, vector<16x128xf32> -> vector<16x128xf32>
    %51 = arith.addf %46, %50 : vector<16x128xf32>
    %52 = vector.extract_strided_slice %7 {offsets = [0, 0], sizes = [16, 128], strides = [1, 1]} : vector<16x256xbf16> to vector<16x128xbf16>
    %c0_38 = arith.constant 0 : index
    %c0_39 = arith.constant 0 : index
    %c0_40 = arith.constant 0 : index
    %53 = vector.load %arg3[%c0_38, %c0_39, %c0_40] : memref<9x16x16xbf16, #tpu.memory_space<vmem>>, vector<1x16x16xbf16>
    %54 = vector.shape_cast %53 : vector<1x16x16xbf16> to vector<16x16xbf16>
    %cst_41 = arith.constant dense<0.000000e+00> : vector<16x128xf32>
    %55 = tpu.matmul %54, %52, %cst_41 {dimension_numbers = #tpu.dot_dimension_numbers<[1], [0], [0], [1], [0, 0, 1, 1], [], []>} : vector<16x16xbf16>, vector<16x128xbf16>, vector<16x128xf32> -> vector<16x128xf32>
    %56 = vector.extract_strided_slice %1 {offsets = [0, 1], sizes = [16, 128], strides = [1, 1]} : vector<16x256xbf16> to vector<16x128xbf16>
    %c1_42 = arith.constant 1 : index
    %c0_43 = arith.constant 0 : index
    %c0_44 = arith.constant 0 : index
    %57 = vector.load %arg3[%c1_42, %c0_43, %c0_44] : memref<9x16x16xbf16, #tpu.memory_space<vmem>>, vector<1x16x16xbf16>
    %58 = vector.shape_cast %57 : vector<1x16x16xbf16> to vector<16x16xbf16>
    %cst_45 = arith.constant dense<0.000000e+00> : vector<16x128xf32>
    %59 = tpu.matmul %58, %56, %cst_45 {dimension_numbers = #tpu.dot_dimension_numbers<[1], [0], [0], [1], [0, 0, 1, 1], [], []>} : vector<16x16xbf16>, vector<16x128xbf16>, vector<16x128xf32> -> vector<16x128xf32>
    %60 = arith.addf %55, %59 : vector<16x128xf32>
    %61 = vector.extract_strided_slice %7 {offsets = [0, 1], sizes = [16, 128], strides = [1, 1]} : vector<16x256xbf16> to vector<16x128xbf16>
    %c2_46 = arith.constant 2 : index
    %c0_47 = arith.constant 0 : index
    %c0_48 = arith.constant 0 : index
    %62 = vector.load %arg3[%c2_46, %c0_47, %c0_48] : memref<9x16x16xbf16, #tpu.memory_space<vmem>>, vector<1x16x16xbf16>
    %63 = vector.shape_cast %62 : vector<1x16x16xbf16> to vector<16x16xbf16>
    %cst_49 = arith.constant dense<0.000000e+00> : vector<16x128xf32>
    %64 = tpu.matmul %63, %61, %cst_49 {dimension_numbers = #tpu.dot_dimension_numbers<[1], [0], [0], [1], [0, 0, 1, 1], [], []>} : vector<16x16xbf16>, vector<16x128xbf16>, vector<16x128xf32> -> vector<16x128xf32>
    %65 = arith.addf %60, %64 : vector<16x128xf32>
    %66 = vector.extract_strided_slice %26 {offsets = [0, 0], sizes = [16, 128], strides = [1, 1]} : vector<16x256xbf16> to vector<16x128xbf16>
    %c3_50 = arith.constant 3 : index
    %c0_51 = arith.constant 0 : index
    %c0_52 = arith.constant 0 : index
    %67 = vector.load %arg3[%c3_50, %c0_51, %c0_52] : memref<9x16x16xbf16, #tpu.memory_space<vmem>>, vector<1x16x16xbf16>
    %68 = vector.shape_cast %67 : vector<1x16x16xbf16> to vector<16x16xbf16>
    %cst_53 = arith.constant dense<0.000000e+00> : vector<16x128xf32>
    %69 = tpu.matmul %68, %66, %cst_53 {dimension_numbers = #tpu.dot_dimension_numbers<[1], [0], [0], [1], [0, 0, 1, 1], [], []>} : vector<16x16xbf16>, vector<16x128xbf16>, vector<16x128xf32> -> vector<16x128xf32>
    %70 = arith.addf %65, %69 : vector<16x128xf32>
    %71 = vector.extract_strided_slice %19 {offsets = [0, 1], sizes = [16, 128], strides = [1, 1]} : vector<16x256xbf16> to vector<16x128xbf16>
    %c4_54 = arith.constant 4 : index
    %c0_55 = arith.constant 0 : index
    %c0_56 = arith.constant 0 : index
    %72 = vector.load %arg3[%c4_54, %c0_55, %c0_56] : memref<9x16x16xbf16, #tpu.memory_space<vmem>>, vector<1x16x16xbf16>
    %73 = vector.shape_cast %72 : vector<1x16x16xbf16> to vector<16x16xbf16>
    %cst_57 = arith.constant dense<0.000000e+00> : vector<16x128xf32>
    %74 = tpu.matmul %73, %71, %cst_57 {dimension_numbers = #tpu.dot_dimension_numbers<[1], [0], [0], [1], [0, 0, 1, 1], [], []>} : vector<16x16xbf16>, vector<16x128xbf16>, vector<16x128xf32> -> vector<16x128xf32>
    %75 = arith.addf %70, %74 : vector<16x128xf32>
    %76 = vector.extract_strided_slice %26 {offsets = [0, 1], sizes = [16, 128], strides = [1, 1]} : vector<16x256xbf16> to vector<16x128xbf16>
    %c5_58 = arith.constant 5 : index
    %c0_59 = arith.constant 0 : index
    %c0_60 = arith.constant 0 : index
    %77 = vector.load %arg3[%c5_58, %c0_59, %c0_60] : memref<9x16x16xbf16, #tpu.memory_space<vmem>>, vector<1x16x16xbf16>
    %78 = vector.shape_cast %77 : vector<1x16x16xbf16> to vector<16x16xbf16>
    %cst_61 = arith.constant dense<0.000000e+00> : vector<16x128xf32>
    %79 = tpu.matmul %78, %76, %cst_61 {dimension_numbers = #tpu.dot_dimension_numbers<[1], [0], [0], [1], [0, 0, 1, 1], [], []>} : vector<16x16xbf16>, vector<16x128xbf16>, vector<16x128xf32> -> vector<16x128xf32>
    %80 = arith.addf %75, %79 : vector<16x128xf32>
    %81 = vector.extract_strided_slice %7 {offsets = [0, 8], sizes = [16, 128], strides = [1, 1]} : vector<16x256xbf16> to vector<16x128xbf16>
    %c6_62 = arith.constant 6 : index
    %c0_63 = arith.constant 0 : index
    %c0_64 = arith.constant 0 : index
    %82 = vector.load %arg3[%c6_62, %c0_63, %c0_64] : memref<9x16x16xbf16, #tpu.memory_space<vmem>>, vector<1x16x16xbf16>
    %83 = vector.shape_cast %82 : vector<1x16x16xbf16> to vector<16x16xbf16>
    %cst_65 = arith.constant dense<0.000000e+00> : vector<16x128xf32>
    %84 = tpu.matmul %83, %81, %cst_65 {dimension_numbers = #tpu.dot_dimension_numbers<[1], [0], [0], [1], [0, 0, 1, 1], [], []>} : vector<16x16xbf16>, vector<16x128xbf16>, vector<16x128xf32> -> vector<16x128xf32>
    %85 = arith.addf %80, %84 : vector<16x128xf32>
    %86 = vector.extract_strided_slice %1 {offsets = [0, 9], sizes = [16, 128], strides = [1, 1]} : vector<16x256xbf16> to vector<16x128xbf16>
    %c7_66 = arith.constant 7 : index
    %c0_67 = arith.constant 0 : index
    %c0_68 = arith.constant 0 : index
    %87 = vector.load %arg3[%c7_66, %c0_67, %c0_68] : memref<9x16x16xbf16, #tpu.memory_space<vmem>>, vector<1x16x16xbf16>
    %88 = vector.shape_cast %87 : vector<1x16x16xbf16> to vector<16x16xbf16>
    %cst_69 = arith.constant dense<0.000000e+00> : vector<16x128xf32>
    %89 = tpu.matmul %88, %86, %cst_69 {dimension_numbers = #tpu.dot_dimension_numbers<[1], [0], [0], [1], [0, 0, 1, 1], [], []>} : vector<16x16xbf16>, vector<16x128xbf16>, vector<16x128xf32> -> vector<16x128xf32>
    %90 = arith.addf %85, %89 : vector<16x128xf32>
    %91 = vector.extract_strided_slice %7 {offsets = [0, 9], sizes = [16, 128], strides = [1, 1]} : vector<16x256xbf16> to vector<16x128xbf16>
    %c8_70 = arith.constant 8 : index
    %c0_71 = arith.constant 0 : index
    %c0_72 = arith.constant 0 : index
    %92 = vector.load %arg3[%c8_70, %c0_71, %c0_72] : memref<9x16x16xbf16, #tpu.memory_space<vmem>>, vector<1x16x16xbf16>
    %93 = vector.shape_cast %92 : vector<1x16x16xbf16> to vector<16x16xbf16>
    %cst_73 = arith.constant dense<0.000000e+00> : vector<16x128xf32>
    %94 = tpu.matmul %93, %91, %cst_73 {dimension_numbers = #tpu.dot_dimension_numbers<[1], [0], [0], [1], [0, 0, 1, 1], [], []>} : vector<16x16xbf16>, vector<16x128xbf16>, vector<16x128xf32> -> vector<16x128xf32>
    %95 = arith.addf %90, %94 : vector<16x128xf32>
    %96 = arith.maximumf %51, %95 : vector<16x128xf32>
    %97 = vector.extract_strided_slice %19 {offsets = [0, 0], sizes = [16, 128], strides = [1, 1]} : vector<16x256xbf16> to vector<16x128xbf16>
    %c0_74 = arith.constant 0 : index
    %c0_75 = arith.constant 0 : index
    %c0_76 = arith.constant 0 : index
    %98 = vector.load %arg3[%c0_74, %c0_75, %c0_76] : memref<9x16x16xbf16, #tpu.memory_space<vmem>>, vector<1x16x16xbf16>
    %99 = vector.shape_cast %98 : vector<1x16x16xbf16> to vector<16x16xbf16>
    %cst_77 = arith.constant dense<0.000000e+00> : vector<16x128xf32>
    %100 = tpu.matmul %99, %97, %cst_77 {dimension_numbers = #tpu.dot_dimension_numbers<[1], [0], [0], [1], [0, 0, 1, 1], [], []>} : vector<16x16xbf16>, vector<16x128xbf16>, vector<16x128xf32> -> vector<16x128xf32>
    %101 = vector.extract_strided_slice %26 {offsets = [0, 0], sizes = [16, 128], strides = [1, 1]} : vector<16x256xbf16> to vector<16x128xbf16>
    %c1_78 = arith.constant 1 : index
    %c0_79 = arith.constant 0 : index
    %c0_80 = arith.constant 0 : index
    %102 = vector.load %arg3[%c1_78, %c0_79, %c0_80] : memref<9x16x16xbf16, #tpu.memory_space<vmem>>, vector<1x16x16xbf16>
    %103 = vector.shape_cast %102 : vector<1x16x16xbf16> to vector<16x16xbf16>
    %cst_81 = arith.constant dense<0.000000e+00> : vector<16x128xf32>
    %104 = tpu.matmul %103, %101, %cst_81 {dimension_numbers = #tpu.dot_dimension_numbers<[1], [0], [0], [1], [0, 0, 1, 1], [], []>} : vector<16x16xbf16>, vector<16x128xbf16>, vector<16x128xf32> -> vector<16x128xf32>
    %105 = arith.addf %100, %104 : vector<16x128xf32>
    %106 = vector.extract_strided_slice %19 {offsets = [0, 1], sizes = [16, 128], strides = [1, 1]} : vector<16x256xbf16> to vector<16x128xbf16>
    %c2_82 = arith.constant 2 : index
    %c0_83 = arith.constant 0 : index
    %c0_84 = arith.constant 0 : index
    %107 = vector.load %arg3[%c2_82, %c0_83, %c0_84] : memref<9x16x16xbf16, #tpu.memory_space<vmem>>, vector<1x16x16xbf16>
    %108 = vector.shape_cast %107 : vector<1x16x16xbf16> to vector<16x16xbf16>
    %cst_85 = arith.constant dense<0.000000e+00> : vector<16x128xf32>
    %109 = tpu.matmul %108, %106, %cst_85 {dimension_numbers = #tpu.dot_dimension_numbers<[1], [0], [0], [1], [0, 0, 1, 1], [], []>} : vector<16x16xbf16>, vector<16x128xbf16>, vector<16x128xf32> -> vector<16x128xf32>
    %110 = arith.addf %105, %109 : vector<16x128xf32>
    %111 = vector.extract_strided_slice %1 {offsets = [0, 8], sizes = [16, 128], strides = [1, 1]} : vector<16x256xbf16> to vector<16x128xbf16>
    %c3_86 = arith.constant 3 : index
    %c0_87 = arith.constant 0 : index
    %c0_88 = arith.constant 0 : index
    %112 = vector.load %arg3[%c3_86, %c0_87, %c0_88] : memref<9x16x16xbf16, #tpu.memory_space<vmem>>, vector<1x16x16xbf16>
    %113 = vector.shape_cast %112 : vector<1x16x16xbf16> to vector<16x16xbf16>
    %cst_89 = arith.constant dense<0.000000e+00> : vector<16x128xf32>
    %114 = tpu.matmul %113, %111, %cst_89 {dimension_numbers = #tpu.dot_dimension_numbers<[1], [0], [0], [1], [0, 0, 1, 1], [], []>} : vector<16x16xbf16>, vector<16x128xbf16>, vector<16x128xf32> -> vector<16x128xf32>
    %115 = arith.addf %110, %114 : vector<16x128xf32>
    %116 = vector.extract_strided_slice %7 {offsets = [0, 8], sizes = [16, 128], strides = [1, 1]} : vector<16x256xbf16> to vector<16x128xbf16>
    %c4_90 = arith.constant 4 : index
    %c0_91 = arith.constant 0 : index
    %c0_92 = arith.constant 0 : index
    %117 = vector.load %arg3[%c4_90, %c0_91, %c0_92] : memref<9x16x16xbf16, #tpu.memory_space<vmem>>, vector<1x16x16xbf16>
    %118 = vector.shape_cast %117 : vector<1x16x16xbf16> to vector<16x16xbf16>
    %cst_93 = arith.constant dense<0.000000e+00> : vector<16x128xf32>
    %119 = tpu.matmul %118, %116, %cst_93 {dimension_numbers = #tpu.dot_dimension_numbers<[1], [0], [0], [1], [0, 0, 1, 1], [], []>} : vector<16x16xbf16>, vector<16x128xbf16>, vector<16x128xf32> -> vector<16x128xf32>
    %120 = arith.addf %115, %119 : vector<16x128xf32>
    %121 = vector.extract_strided_slice %1 {offsets = [0, 9], sizes = [16, 128], strides = [1, 1]} : vector<16x256xbf16> to vector<16x128xbf16>
    %c5_94 = arith.constant 5 : index
    %c0_95 = arith.constant 0 : index
    %c0_96 = arith.constant 0 : index
    %122 = vector.load %arg3[%c5_94, %c0_95, %c0_96] : memref<9x16x16xbf16, #tpu.memory_space<vmem>>, vector<1x16x16xbf16>
    %123 = vector.shape_cast %122 : vector<1x16x16xbf16> to vector<16x16xbf16>
    %cst_97 = arith.constant dense<0.000000e+00> : vector<16x128xf32>
    %124 = tpu.matmul %123, %121, %cst_97 {dimension_numbers = #tpu.dot_dimension_numbers<[1], [0], [0], [1], [0, 0, 1, 1], [], []>} : vector<16x16xbf16>, vector<16x128xbf16>, vector<16x128xf32> -> vector<16x128xf32>
    %125 = arith.addf %120, %124 : vector<16x128xf32>
    %126 = vector.extract_strided_slice %19 {offsets = [0, 8], sizes = [16, 128], strides = [1, 1]} : vector<16x256xbf16> to vector<16x128xbf16>
    %c6_98 = arith.constant 6 : index
    %c0_99 = arith.constant 0 : index
    %c0_100 = arith.constant 0 : index
    %127 = vector.load %arg3[%c6_98, %c0_99, %c0_100] : memref<9x16x16xbf16, #tpu.memory_space<vmem>>, vector<1x16x16xbf16>
    %128 = vector.shape_cast %127 : vector<1x16x16xbf16> to vector<16x16xbf16>
    %cst_101 = arith.constant dense<0.000000e+00> : vector<16x128xf32>
    %129 = tpu.matmul %128, %126, %cst_101 {dimension_numbers = #tpu.dot_dimension_numbers<[1], [0], [0], [1], [0, 0, 1, 1], [], []>} : vector<16x16xbf16>, vector<16x128xbf16>, vector<16x128xf32> -> vector<16x128xf32>
    %130 = arith.addf %125, %129 : vector<16x128xf32>
    %131 = vector.extract_strided_slice %26 {offsets = [0, 8], sizes = [16, 128], strides = [1, 1]} : vector<16x256xbf16> to vector<16x128xbf16>
    %c7_102 = arith.constant 7 : index
    %c0_103 = arith.constant 0 : index
    %c0_104 = arith.constant 0 : index
    %132 = vector.load %arg3[%c7_102, %c0_103, %c0_104] : memref<9x16x16xbf16, #tpu.memory_space<vmem>>, vector<1x16x16xbf16>
    %133 = vector.shape_cast %132 : vector<1x16x16xbf16> to vector<16x16xbf16>
    %cst_105 = arith.constant dense<0.000000e+00> : vector<16x128xf32>
    %134 = tpu.matmul %133, %131, %cst_105 {dimension_numbers = #tpu.dot_dimension_numbers<[1], [0], [0], [1], [0, 0, 1, 1], [], []>} : vector<16x16xbf16>, vector<16x128xbf16>, vector<16x128xf32> -> vector<16x128xf32>
    %135 = arith.addf %130, %134 : vector<16x128xf32>
    %136 = vector.extract_strided_slice %19 {offsets = [0, 9], sizes = [16, 128], strides = [1, 1]} : vector<16x256xbf16> to vector<16x128xbf16>
    %c8_106 = arith.constant 8 : index
    %c0_107 = arith.constant 0 : index
    %c0_108 = arith.constant 0 : index
    %137 = vector.load %arg3[%c8_106, %c0_107, %c0_108] : memref<9x16x16xbf16, #tpu.memory_space<vmem>>, vector<1x16x16xbf16>
    %138 = vector.shape_cast %137 : vector<1x16x16xbf16> to vector<16x16xbf16>
    %cst_109 = arith.constant dense<0.000000e+00> : vector<16x128xf32>
    %139 = tpu.matmul %138, %136, %cst_109 {dimension_numbers = #tpu.dot_dimension_numbers<[1], [0], [0], [1], [0, 0, 1, 1], [], []>} : vector<16x16xbf16>, vector<16x128xbf16>, vector<16x128xf32> -> vector<16x128xf32>
    %140 = arith.addf %135, %139 : vector<16x128xf32>
    %141 = arith.maximumf %96, %140 : vector<16x128xf32>
    %142 = vector.extract_strided_slice %26 {offsets = [0, 0], sizes = [16, 128], strides = [1, 1]} : vector<16x256xbf16> to vector<16x128xbf16>
    %c0_110 = arith.constant 0 : index
    %c0_111 = arith.constant 0 : index
    %c0_112 = arith.constant 0 : index
    %143 = vector.load %arg3[%c0_110, %c0_111, %c0_112] : memref<9x16x16xbf16, #tpu.memory_space<vmem>>, vector<1x16x16xbf16>
    %144 = vector.shape_cast %143 : vector<1x16x16xbf16> to vector<16x16xbf16>
    %cst_113 = arith.constant dense<0.000000e+00> : vector<16x128xf32>
    %145 = tpu.matmul %144, %142, %cst_113 {dimension_numbers = #tpu.dot_dimension_numbers<[1], [0], [0], [1], [0, 0, 1, 1], [], []>} : vector<16x16xbf16>, vector<16x128xbf16>, vector<16x128xf32> -> vector<16x128xf32>
    %146 = vector.extract_strided_slice %19 {offsets = [0, 1], sizes = [16, 128], strides = [1, 1]} : vector<16x256xbf16> to vector<16x128xbf16>
    %c1_114 = arith.constant 1 : index
    %c0_115 = arith.constant 0 : index
    %c0_116 = arith.constant 0 : index
    %147 = vector.load %arg3[%c1_114, %c0_115, %c0_116] : memref<9x16x16xbf16, #tpu.memory_space<vmem>>, vector<1x16x16xbf16>
    %148 = vector.shape_cast %147 : vector<1x16x16xbf16> to vector<16x16xbf16>
    %cst_117 = arith.constant dense<0.000000e+00> : vector<16x128xf32>
    %149 = tpu.matmul %148, %146, %cst_117 {dimension_numbers = #tpu.dot_dimension_numbers<[1], [0], [0], [1], [0, 0, 1, 1], [], []>} : vector<16x16xbf16>, vector<16x128xbf16>, vector<16x128xf32> -> vector<16x128xf32>
    %150 = arith.addf %145, %149 : vector<16x128xf32>
    %151 = vector.extract_strided_slice %26 {offsets = [0, 1], sizes = [16, 128], strides = [1, 1]} : vector<16x256xbf16> to vector<16x128xbf16>
    %c2_118 = arith.constant 2 : index
    %c0_119 = arith.constant 0 : index
    %c0_120 = arith.constant 0 : index
    %152 = vector.load %arg3[%c2_118, %c0_119, %c0_120] : memref<9x16x16xbf16, #tpu.memory_space<vmem>>, vector<1x16x16xbf16>
    %153 = vector.shape_cast %152 : vector<1x16x16xbf16> to vector<16x16xbf16>
    %cst_121 = arith.constant dense<0.000000e+00> : vector<16x128xf32>
    %154 = tpu.matmul %153, %151, %cst_121 {dimension_numbers = #tpu.dot_dimension_numbers<[1], [0], [0], [1], [0, 0, 1, 1], [], []>} : vector<16x16xbf16>, vector<16x128xbf16>, vector<16x128xf32> -> vector<16x128xf32>
    %155 = arith.addf %150, %154 : vector<16x128xf32>
    %156 = vector.extract_strided_slice %7 {offsets = [0, 8], sizes = [16, 128], strides = [1, 1]} : vector<16x256xbf16> to vector<16x128xbf16>
    %c3_122 = arith.constant 3 : index
    %c0_123 = arith.constant 0 : index
    %c0_124 = arith.constant 0 : index
    %157 = vector.load %arg3[%c3_122, %c0_123, %c0_124] : memref<9x16x16xbf16, #tpu.memory_space<vmem>>, vector<1x16x16xbf16>
    %158 = vector.shape_cast %157 : vector<1x16x16xbf16> to vector<16x16xbf16>
    %cst_125 = arith.constant dense<0.000000e+00> : vector<16x128xf32>
    %159 = tpu.matmul %158, %156, %cst_125 {dimension_numbers = #tpu.dot_dimension_numbers<[1], [0], [0], [1], [0, 0, 1, 1], [], []>} : vector<16x16xbf16>, vector<16x128xbf16>, vector<16x128xf32> -> vector<16x128xf32>
    %160 = arith.addf %155, %159 : vector<16x128xf32>
    %161 = vector.extract_strided_slice %1 {offsets = [0, 9], sizes = [16, 128], strides = [1, 1]} : vector<16x256xbf16> to vector<16x128xbf16>
    %c4_126 = arith.constant 4 : index
    %c0_127 = arith.constant 0 : index
    %c0_128 = arith.constant 0 : index
    %162 = vector.load %arg3[%c4_126, %c0_127, %c0_128] : memref<9x16x16xbf16, #tpu.memory_space<vmem>>, vector<1x16x16xbf16>
    %163 = vector.shape_cast %162 : vector<1x16x16xbf16> to vector<16x16xbf16>
    %cst_129 = arith.constant dense<0.000000e+00> : vector<16x128xf32>
    %164 = tpu.matmul %163, %161, %cst_129 {dimension_numbers = #tpu.dot_dimension_numbers<[1], [0], [0], [1], [0, 0, 1, 1], [], []>} : vector<16x16xbf16>, vector<16x128xbf16>, vector<16x128xf32> -> vector<16x128xf32>
    %165 = arith.addf %160, %164 : vector<16x128xf32>
    %166 = vector.extract_strided_slice %7 {offsets = [0, 9], sizes = [16, 128], strides = [1, 1]} : vector<16x256xbf16> to vector<16x128xbf16>
    %c5_130 = arith.constant 5 : index
    %c0_131 = arith.constant 0 : index
    %c0_132 = arith.constant 0 : index
    %167 = vector.load %arg3[%c5_130, %c0_131, %c0_132] : memref<9x16x16xbf16, #tpu.memory_space<vmem>>, vector<1x16x16xbf16>
    %168 = vector.shape_cast %167 : vector<1x16x16xbf16> to vector<16x16xbf16>
    %cst_133 = arith.constant dense<0.000000e+00> : vector<16x128xf32>
    %169 = tpu.matmul %168, %166, %cst_133 {dimension_numbers = #tpu.dot_dimension_numbers<[1], [0], [0], [1], [0, 0, 1, 1], [], []>} : vector<16x16xbf16>, vector<16x128xbf16>, vector<16x128xf32> -> vector<16x128xf32>
    %170 = arith.addf %165, %169 : vector<16x128xf32>
    %171 = vector.extract_strided_slice %26 {offsets = [0, 8], sizes = [16, 128], strides = [1, 1]} : vector<16x256xbf16> to vector<16x128xbf16>
    %c6_134 = arith.constant 6 : index
    %c0_135 = arith.constant 0 : index
    %c0_136 = arith.constant 0 : index
    %172 = vector.load %arg3[%c6_134, %c0_135, %c0_136] : memref<9x16x16xbf16, #tpu.memory_space<vmem>>, vector<1x16x16xbf16>
    %173 = vector.shape_cast %172 : vector<1x16x16xbf16> to vector<16x16xbf16>
    %cst_137 = arith.constant dense<0.000000e+00> : vector<16x128xf32>
    %174 = tpu.matmul %173, %171, %cst_137 {dimension_numbers = #tpu.dot_dimension_numbers<[1], [0], [0], [1], [0, 0, 1, 1], [], []>} : vector<16x16xbf16>, vector<16x128xbf16>, vector<16x128xf32> -> vector<16x128xf32>
    %175 = arith.addf %170, %174 : vector<16x128xf32>
    %176 = vector.extract_strided_slice %19 {offsets = [0, 9], sizes = [16, 128], strides = [1, 1]} : vector<16x256xbf16> to vector<16x128xbf16>
    %c7_138 = arith.constant 7 : index
    %c0_139 = arith.constant 0 : index
    %c0_140 = arith.constant 0 : index
    %177 = vector.load %arg3[%c7_138, %c0_139, %c0_140] : memref<9x16x16xbf16, #tpu.memory_space<vmem>>, vector<1x16x16xbf16>
    %178 = vector.shape_cast %177 : vector<1x16x16xbf16> to vector<16x16xbf16>
    %cst_141 = arith.constant dense<0.000000e+00> : vector<16x128xf32>
    %179 = tpu.matmul %178, %176, %cst_141 {dimension_numbers = #tpu.dot_dimension_numbers<[1], [0], [0], [1], [0, 0, 1, 1], [], []>} : vector<16x16xbf16>, vector<16x128xbf16>, vector<16x128xf32> -> vector<16x128xf32>
    %180 = arith.addf %175, %179 : vector<16x128xf32>
    %181 = vector.extract_strided_slice %26 {offsets = [0, 9], sizes = [16, 128], strides = [1, 1]} : vector<16x256xbf16> to vector<16x128xbf16>
    %c8_142 = arith.constant 8 : index
    %c0_143 = arith.constant 0 : index
    %c0_144 = arith.constant 0 : index
    %182 = vector.load %arg3[%c8_142, %c0_143, %c0_144] : memref<9x16x16xbf16, #tpu.memory_space<vmem>>, vector<1x16x16xbf16>
    %183 = vector.shape_cast %182 : vector<1x16x16xbf16> to vector<16x16xbf16>
    %cst_145 = arith.constant dense<0.000000e+00> : vector<16x128xf32>
    %184 = tpu.matmul %183, %181, %cst_145 {dimension_numbers = #tpu.dot_dimension_numbers<[1], [0], [0], [1], [0, 0, 1, 1], [], []>} : vector<16x16xbf16>, vector<16x128xbf16>, vector<16x128xf32> -> vector<16x128xf32>
    %185 = arith.addf %180, %184 : vector<16x128xf32>
    %186 = arith.maximumf %141, %185 : vector<16x128xf32>
    %c0_146 = arith.constant 0 : index
    %c0_147 = arith.constant 0 : index
    %187 = vector.load %arg4[%c0_146, %c0_147] : memref<16x1xf32, #tpu.memory_space<vmem>>, vector<16x1xf32>
    %188 = vector.broadcast %187 : vector<16x1xf32> to vector<16x128xf32>
    %189 = arith.addf %186, %188 : vector<16x128xf32>
    %cst_148 = arith.constant 0.000000e+00 : f32
    %190 = vector.broadcast %cst_148 : f32 to vector<16x128xf32>
    %191 = arith.maximumf %189, %190 : vector<16x128xf32>
    %c0_149 = arith.constant 0 : index
    %c0_150 = arith.constant 0 : index
    %192 = vector.load %arg5[%c0_149, %c0_150] : memref<16x128xf32, #tpu.memory_space<vmem>>, vector<16x128xf32>
    tpu.vector_store %arg5[%c0_149, %c0_150], %191 {strides = array<i32>} : memref<16x128xf32, #tpu.memory_space<vmem>>, vector<16x128xf32>,
    return
  }
  func.func @transform_0(%arg0: i32, %arg1: i32) -> (i32, i32, i32) {
    %c0_i32 = arith.constant 0 : i32
    %c0_i32_0 = arith.constant 0 : i32
    %c0_i32_1 = arith.constant 0 : i32
    return %c0_i32, %c0_i32_0, %arg0 : i32, i32, i32
  }
  func.func @transform_1(%arg0: i32, %arg1: i32) -> (i32, i32, i32) {
    %c0_i32 = arith.constant 0 : i32
    %c0_i32_0 = arith.constant 0 : i32
    %c0_i32_1 = arith.constant 0 : i32
    return %c0_i32, %arg1, %c0_i32_0 : i32, i32, i32
  }
  func.func @transform_2(%arg0: i32, %arg1: i32) -> (i32, i32) {
    %c0_i32 = arith.constant 0 : i32
    %c0_i32_0 = arith.constant 0 : i32
    return %arg1, %c0_i32 : i32, i32
  }
  func.func @transform_3(%arg0: i32, %arg1: i32) -> (i32, i32) {
    %c0_i32 = arith.constant 0 : i32
    return %arg1, %arg0 : i32, i32
  }
}

</mosaic_0001>

<bundles_post_ra>
// kernel: tpu_custom_call.1
= control target key start
LH: loop header
LB: loop body
LE: loop exit
PB: predicated region body
PF: predicated region fallthrough
CT: control target
= control target key end

     0   :  { %8 = vsyncpa [#allocation3], 0  ;;  %s1302_s0 = inlined_call_operand.hbm [shape: bf16[4,16,256], index: 0, kind: input, shape index: {}]   ;;  %s1303_s1 = inlined_call_operand.hbm [shape: bf16[9,16,16], index: 1, kind: input, shape index: {}]   ;;  %s1304_s2 = inlined_call_operand.vmem [shape: f32[16,1], index: 2, kind: input, shape index: {}]   ;;  %s1305_s3 = inlined_call_operand.hbm [shape: f32[16,128], index: 3, kind: output, shape index: {}]  }
   0x1   :  { %9 = vsyncpa [#allocation6], 0 }
   0x2   :  { %10 = vsyncpa [#allocation4], 0  ;;  %s15_s14 = sshll.u32 %s1302_s0, 4  ;;  %s1085_s15 = smov [#allocation2]   ;;  %s16_s14 = int_to_ptr.hbm [resolvable:$true] %s15_s14 }
   0x3   :  { %s17_s16 = sshll.u32 %s1085_s15, 4  ;;  %s28_s19 = sshll.u32 %s1303_s1, 4  ;;  %s18_s16 = int_to_ptr.vmem [resolvable:$true] %s17_s16  ;;  %s29_s19 = int_to_ptr.hbm [resolvable:$true] %s28_s19 }
   0x4   :  { %s1086_s20 = smov 128   ;;  %s1087_s21 = smov 8  }
   0x5   :  { %23 = dma.hbm_to_vmem [thread:$0]  %s16_s14, 1024, %s18_s16, [#allocation3], %s1086_s20, %s1086_s20, %s1087_s21  }
   0x6   :  { %s1088_s22 = smov [#allocation5]   ;;  %s1089_s24 = smov 64  }
   0x7   :  { %s30_s23 = sshll.u32 %s1088_s22, 4  ;;  %s1090_s0 = smov 4   ;;  %s31_s23 = int_to_ptr.vmem [resolvable:$true] %s30_s23 }
   0x8   :  { %36 = dma.hbm_to_vmem [thread:$0]  %s29_s19, 1152, %s31_s23, [#allocation6], %s1089_s24, %s1089_s24, %s1090_s0  }
   0x9   :  { %1079 = dma.done.wait [#allocation3], 1024  }
   0xa   :  { %1080 = vsyncadd [#allocation3], 4294966272 }
   0xb   :  { %1081 = dma.done.wait [#allocation6], 1152  }
   0xc   :  { %1082 = vsyncadd [#allocation6], 4294966144  ;;  %v888_v0 = vld [vmem:[#allocation2] sm:$0xf]  ;;  %v978_v1 = vld [vmem:[#allocation2 + $0x4] sm:$0xf0] }
   0xd   :  { %v889_v2 = vor.u32 %v978_v1, %v888_v0  ;;  %v906_v3 = vld [vmem:[#allocation2 + $0x20] sm:$0xf]  ;;  %v985_v4 = vld [vmem:[#allocation2 + $0x24] sm:$0xf0]  ;;  %v879_v5 = vld [vmem:[#allocation2 + $0x10] sm:$0xf] }
   0xe   :  { %s1091_s1 = smov 120   ;;  %s1092_s25 = smov 127   ;;  %v977_v6 = vld [vmem:[#allocation2 + $0x4] sm:$0xf]  ;;  %v1127_v7 = vor.u32 %v985_v4, %v906_v3  ;;  %v981_v8 = vld [vmem:[#allocation2 + $0x14] sm:$0xf0] }
   0xf   :  { %268 = vrot.lane.b32.xlu1 %v889_v2, %s1091_s1  ;;  %126 = vrot.lane.b32.xlu0 %v889_v2, %s1092_s25  ;;  %v895_v9 = vld [vmem:[#allocation2 + $0x8] sm:$0xf0]  ;;  %v1129_v10 = vor.u32 %v981_v8, %v879_v5  ;;  %v915_v11 = vld [vmem:[#allocation2 + $0x30] sm:$0xf]  ;;  %v988_v12 = vld [vmem:[#allocation2 + $0x34] sm:$0xf0] }
  0x10   :  { %108 = vmatpush.bf16.msra.mxu1 %v889_v2  ;;  %v1131_v13 = vor.u32 %v988_v12, %v915_v11  ;;  %179 = vmatpush.bf16.msra.mxu3 %v1127_v7  ;;  %v898_v14 = vor.u32 %v977_v6, %v895_v9  ;;  %v980_v15 = vld [vmem:[#allocation2 + $0x14] sm:$0xf]  ;;  %v936_v16 = vld [vmem:[#allocation2 + $0x18] sm:$0xf0]  ;;  %v984_v18 = vld [vmem:[#allocation2 + $0x24] sm:$0xf] }
  0x11   :  { %305 = vrot.lane.b32.xlu2 %v1129_v10, %s1091_s1  ;;  %80 = vmatpush.bf16.msra.mxu0 %v1129_v10  ;;  %v939_v17 = vor.u32 %v980_v15, %v936_v16  ;;  %v922_v19 = vld [vmem:[#allocation2 + $0x28] sm:$0xf0]  ;;  %s1093_s26 = smov 119   ;;  %vm69_vm0 = vcmask 130048   ;;  %v1148_v22 = vld [vmem:[#allocation5 + $0x18] sm:$0xff]  ;;  %v1167_v26 = vld [vmem:[#allocation5] sm:$0xff] }
  0x12   :  { %v925_v20 = vor.u32 %v984_v18, %v922_v19  ;;  %v1146_v21 = vld [vmem:[#allocation5 + $0x8] sm:$0xff]  ;;  %v987_v23 = vld [vmem:[#allocation2 + $0x34] sm:$0xf]  ;;  %v951_v24 = vld [vmem:[#allocation2 + $0x38] sm:$0xf0]  ;;  %vm272_vm1 = vcmask 982016  }
  0x13   :  { %908 = vmatmul.msk.bf16.vlgmr.msra.gmra.mxu3 %vm69_vm0, %v1148_v22  ;;  %v954_v25 = vor.u32 %v987_v23, %v951_v24  ;;  %890 = vmatmul.msk.bf16.vlgmr.msra.gmra.mxu1 %vm69_vm0, %v1167_v26  ;;  %v1171_v28 = vld [vmem:[#allocation5 + $0x20] sm:$0xff]  ;;  %v1178_v31 = vld [vmem:[#allocation5 + $0x38] sm:$0xff]  ;;  %vm130_vm2 = vcmask 1039360   ;;  %v1185_v38 = vld [vmem:[#allocation5 + $0x10] sm:$0xff]  ;;  %vm342_vm3 = vcmask 973824   ;;  %s859_s7 = sshll.u32 %s1305_s3, 4  ;;  %s860_s7 = int_to_ptr.hbm [resolvable:$true] %s859_s7 }
  0x14   :  { %881 = vmatmul.msk.bf16.vlgmr.msra.gmra.mxu0 %vm69_vm0, %v1146_v21  ;;  %v1191_v43 = vld [vmem:[#allocation5 + $0x28] sm:$0xff]  ;;  %v1197_v49 = vld [vmem:[#allocation5 + $0x30] sm:$0xff]  ;;  %v1199_v50 = vld [vmem:[#allocation5 + $0x40] sm:$0xff] }
  0x15   :  { %215 = vmatpush.bf16.msrb.mxu0 %v1131_v13  ;;  %v836_v16 = vld [vmem:[%s1304_s2 + $0x8] sm:$0xff] }
  0x17   :  { %270 = vrot.lane.b32.xlu1 %v898_v14, %s1091_s1  ;;  %128 = vrot.lane.b32.xlu0 %v898_v14, %s1092_s25 }
  0x19   :  { %307 = vrot.lane.b32.xlu2 %v939_v17, %s1091_s1 }
  0x1f   :  { %237 = vrot.lane.b32.xlu1 %v925_v20, %s1092_s25  ;;  %235 = vrot.lane.b32.xlu0 %v1127_v7, %s1092_s25 }
  0x21   :  { %338 = vrot.lane.b32.xlu2 %v889_v2, %s1093_s26 }
  0x24   :  { %917 = vmatmul.msk.bf16.vlgmr.msrb.gmra.mxu0 %vm69_vm0, %v1171_v28 }
  0x27   :  { %392 = vrot.lane.b32.xlu1 %v1129_v10, %s1092_s25  ;;  %340 = vrot.lane.b32.xlu0 %v898_v14, %s1093_s26  ;;  %v1094_v14 = vmov 0  }
  0x28   :  { %1005 = vset.pattern.permute.xlu0 %v1094_v14  ;;  %1006 = vset.pattern.permute.xlu1 %v1094_v14 }
  0x29   :  { %394 = vrot.lane.b32.xlu2 %v939_v17, %s1092_s25 }
  0x2f   :  { %449 = vrot.lane.b32.xlu0 %v1131_v13, %s1092_s25  ;;  %451 = vrot.lane.b32.xlu1 %v954_v25, %s1092_s25 }
  0x31   :  { %503 = vrot.lane.b32.xlu2 %v1129_v10, %s1093_s26 }
  0x37   :  { %505 = vrot.lane.b32.xlu0 %v939_v17, %s1093_s26  ;;  %663 = vrot.lane.b32.xlu1 %v1127_v7, %s1093_s26 }
  0x39   :  { %665 = vrot.lane.b32.xlu2 %v925_v20, %s1093_s26 }
  0x3f   :  { %619 = vrot.lane.b32.xlu0 %v1127_v7, %s1091_s1  ;;  %621 = vrot.lane.b32.xlu1 %v925_v20, %s1091_s1 }
  0x41   :  { %641 = vrot.lane.b32.xlu2 %v1131_v13, %s1091_s1 }
  0x47   :  { %643 = vrot.lane.b32.xlu0 %v954_v25, %s1091_s1  ;;  %811 = vrot.lane.b32.xlu1 %v1131_v13, %s1093_s26 }
  0x49   :  { %813 = vrot.lane.b32.xlu2 %v954_v25, %s1093_s26 }
  0x4f   :  { %844 = vperm.xlu1 %1006, %v836_v16  }
  0x6b   :  { %v306_v27 = vpop.permute.xlu2 %305 }
  0x73   :  { %v308_v29 = vpop.permute.xlu2 %307 }
  0x74   :  { %v1176_v30 = vsel %vm272_vm1, %v306_v27, %v308_v29 }
  0x75   :  { %321 = vmatpush.bf16.msrb.mxu3 %v1176_v30 }
  0x78   :  { %940 = vmatmul.msk.bf16.vlgmr.msrb.gmra.mxu3 %vm69_vm0, %v1178_v31 }
  0x7b   :  { %v339_v39 = vpop.permute.xlu2 %338 }
  0x81   :  { %v269_v32 = vpop.permute.xlu1 %268  ;;  %v127_v33 = vpop.permute.xlu0 %126 }
  0x83   :  { %v395_v44 = vpop.permute.xlu2 %394 }
  0x89   :  { %v271_v34 = vpop.permute.xlu1 %270  ;;  %v129_v35 = vpop.permute.xlu0 %128 }
  0x8a   :  { %v131_v36 = vsel %vm130_vm2, %v127_v33, %v129_v35  ;;  %v273_v37 = vsel %vm272_vm1, %v269_v32, %v271_v34 }
  0x8b   :  { %143 = vmatpush.bf16.msra.mxu2 %v131_v36  ;;  %v504_v54 = vpop.permute.xlu2 %503 }
  0x8e   :  { %899 = vmatmul.msk.bf16.vlgmr.msra.gmra.mxu2 %vm69_vm0, %v1185_v38 }
  0x8f   :  { %285 = vmatpush.bf16.msrb.mxu2 %v273_v37 }
  0x90   :  { %v110_v6 = vpop.f32.mrf.mxu1 }
  0x91   :  { %v238_v40 = vpop.permute.xlu1 %237  ;;  %v236_v41 = vpop.permute.xlu0 %235 }
  0x92   :  { %v239_v42 = vsel %vm130_vm2, %v236_v41, %v238_v40  ;;  %v82_v2 = vpop.f32.mrf.mxu0 }
  0x93   :  { %385 = vmatpush.bf16.msra.mxu2 %v1129_v10  ;;  %251 = vmatpush.bf16.msrb.mxu1 %v239_v42  ;;  %v666_v58 = vpop.permute.xlu2 %665 }
  0x96   :  { %926 = vmatmul.msk.bf16.vlgmr.msrb.gmra.mxu1 %vm69_vm0, %v1191_v43  ;;  %v181_v11 = vpop.f32.mrf.mxu3 }
  0x97   :  { %371 = vmatpush.bf16.msra.mxu1 %v131_v36 }
  0x98   :  { %v112_v9 = vpop.f32.mrf.mxu1 }
  0x99   :  { %v393_v45 = vpop.permute.xlu1 %392  ;;  %v341_v46 = vpop.permute.xlu0 %340 }
  0x9a   :  { %v396_v47 = vsel %vm130_vm2, %v393_v45, %v395_v44  ;;  %v343_v48 = vsel %vm342_vm3, %v339_v39, %v341_v46  ;;  %v84_v8 = vpop.f32.mrf.mxu0 }
  0x9b   :  { %437 = vmatpush.bf16.msrb.mxu1 %v239_v42  ;;  %355 = vmatpush.bf16.msra.mxu0 %v343_v48  ;;  %v642_v62 = vpop.permute.xlu2 %641  ;;  %v113_v10 = vadd.f32 %v112_v9, %v84_v8 }
  0x9c   :  { %405 = vmatpush.bf16.msra.mxu3 %v396_v47 }
  0x9e   :  { %931 = vmatmul.msk.bf16.vlgmr.msrb.gmra.mxu2 %vm69_vm0, %v1197_v49  ;;  %945 = vmatmul.msk.bf16.vlgmr.msra.gmra.mxu0 %vm69_vm0, %v1199_v50  ;;  %v183_v12 = vpop.f32.mrf.mxu3 }
  0x9f   :  { %421 = vmatpush.bf16.msrb.mxu0 %v1131_v13  ;;  %948 = vmatmul.msk.bf16.vlgmr.msra.gmra.mxu3 %vm69_vm0, %v1185_v38 }
  0xa0   :  { %478 = vmatpush.bf16.msrb.mxu3 %v1176_v30 }
  0xa1   :  { %v450_v51 = vpop.permute.xlu0 %449  ;;  %v452_v52 = vpop.permute.xlu1 %451 }
  0xa2   :  { %v453_v53 = vsel %vm130_vm2, %v450_v51, %v452_v52  ;;  %v217_v15 = vpop.f32.mrf.mxu0 }
  0xa3   :  { %494 = vmatpush.bf16.msra.mxu0 %v343_v48  ;;  %462 = vmatpush.bf16.msrb.mxu2 %v453_v53  ;;  %v814_v3 = vpop.permute.xlu2 %813 }
  0xa4   :  { %548 = vmatpush.bf16.msra.mxu3 %v1127_v7  ;;  %v111_v7 = vadd.f32 %v110_v6, %v82_v2 }
  0xa6   :  { %946 = vmatmul.msk.bf16.vlgmr.msra.gmra.mxu1 %vm69_vm0, %v1146_v21 }
  0xa9   :  { %v506_v55 = vpop.permute.xlu0 %505  ;;  %v664_v57 = vpop.permute.xlu1 %663 }
  0xaa   :  { %v507_v56 = vsel %vm342_vm3, %v504_v54, %v506_v55  ;;  %v667_v1 = vsel %vm342_vm3, %v664_v57, %v666_v58  ;;  %v219_v19 = vpop.f32.mrf.mxu0 }
  0xab   :  { %516 = vmatpush.bf16.msra.mxu1 %v507_v56 }
  0xae   :  { %947 = vmatmul.msk.bf16.vlgmr.msra.gmra.mxu2 %vm69_vm0, %v1167_v26  ;;  %949 = vmatmul.msk.bf16.vlgmr.msrb.gmra.mxu0 %vm69_vm0, %v1148_v22 }
  0xaf   :  { %956 = vmatmul.msk.bf16.vlgmr.msrb.gmra.mxu3 %vm69_vm0, %v1197_v49  ;;  %562 = vmatpush.bf16.msrb.mxu0 %v239_v42 }
  0xb0   :  { %610 = vmatpush.bf16.msrb.mxu3 %v343_v48  ;;  %534 = vmatpush.bf16.msra.mxu2 %v1131_v13 }
  0xb1   :  { %v620_v59 = vpop.permute.xlu0 %619  ;;  %v622_v60 = vpop.permute.xlu1 %621 }
  0xb2   :  { %v623_v61 = vsel %vm272_vm1, %v620_v59, %v622_v60 }
  0xb6   :  { %950 = vmatmul.msk.bf16.vlgmr.msrb.gmra.mxu1 %vm69_vm0, %v1171_v28 }
  0xb7   :  { %578 = vmatpush.bf16.msrb.mxu1 %v273_v37 }
  0xb9   :  { %v644_v63 = vpop.permute.xlu0 %643  ;;  %v812_v4 = vpop.permute.xlu1 %811 }
  0xba   :  { %v645_v0 = vsel %vm272_vm1, %v642_v62, %v644_v63  ;;  %v815_v5 = vsel %vm342_vm3, %v812_v4, %v814_v3 }
  0xbe   :  { %955 = vmatmul.msk.bf16.vlgmr.msrb.gmra.mxu2 %vm69_vm0, %v1191_v43  ;;  %957 = vmatmul.msk.bf16.vlgmr.msra.gmra.mxu0 %vm69_vm0, %v1178_v31 }
  0xbf   :  { %960 = vmatmul.msk.bf16.vlgmr.msra.gmra.mxu3 %vm69_vm0, %v1167_v26  ;;  %594 = vmatpush.bf16.msrb.mxu2 %v1176_v30 }
  0xc0   :  { %694 = vmatpush.bf16.msra.mxu3 %v239_v42  ;;  %632 = vmatpush.bf16.msra.mxu0 %v623_v61 }
  0xc6   :  { %958 = vmatmul.msk.bf16.vlgmr.msra.gmra.mxu1 %vm69_vm0, %v1199_v50 }
  0xc7   :  { %654 = vmatpush.bf16.msra.mxu1 %v645_v0 }
  0xce   :  { %959 = vmatmul.msk.bf16.vlgmr.msra.gmra.mxu2 %vm69_vm0, %v1146_v21  ;;  %961 = vmatmul.msk.bf16.vlgmr.msrb.gmra.mxu0 %vm69_vm0, %v1185_v38 }
  0xcf   :  { %964 = vmatmul.msk.bf16.vlgmr.msrb.gmra.mxu3 %vm69_vm0, %v1191_v43  ;;  %676 = vmatpush.bf16.msra.mxu2 %v667_v1 }
  0xd0   :  { %754 = vmatpush.bf16.msrb.mxu3 %v343_v48  ;;  %708 = vmatpush.bf16.msrb.mxu0 %v1131_v13  ;;  %v835_v13 = vld [vmem:[%s1304_s2] sm:$0xff]  ;;  %s1095_s2 = smov [#allocation7]  }
  0xd1   :  { %839 = vperm.xlu0 %1005, %v835_v13   ;;  %s857_s4 = sshll.u32 %s1095_s2, 4  ;;  %s858_s4 = int_to_ptr.vmem [resolvable:$true] %s857_s4 }
  0xd6   :  { %962 = vmatmul.msk.bf16.vlgmr.msrb.gmra.mxu1 %vm69_vm0, %v1148_v22 }
  0xd7   :  { %722 = vmatpush.bf16.msrb.mxu1 %v453_v53 }
  0xde   :  { %963 = vmatmul.msk.bf16.vlgmr.msrb.gmra.mxu2 %vm69_vm0, %v1171_v28  ;;  %965 = vmatmul.msk.bf16.vlgmr.msra.gmra.mxu0 %vm69_vm0, %v1197_v49 }
  0xdf   :  { %738 = vmatpush.bf16.msrb.mxu2 %v1176_v30  ;;  %770 = vmatpush.bf16.msra.mxu0 %v507_v56 }
  0xe0   :  { %968 = vmatmul.msk.bf16.vlgmr.msra.gmra.mxu3 %vm69_vm0, %v1146_v21 }
  0xe1   :  { %824 = vmatpush.bf16.msra.mxu3 %v815_v5 }
  0xe6   :  { %966 = vmatmul.msk.bf16.vlgmr.msra.gmra.mxu1 %vm69_vm0, %v1178_v31 }
  0xe7   :  { %786 = vmatpush.bf16.msra.mxu1 %v645_v0 }
  0xee   :  { %967 = vmatmul.msk.bf16.vlgmr.msra.gmra.mxu2 %vm69_vm0, %v1199_v50  ;;  %969 = vmatmul.msk.bf16.vlgmr.msrb.gmra.mxu0 %vm69_vm0, %v1167_v26 }
  0xef   :  { %802 = vmatpush.bf16.msra.mxu2 %v667_v1 }
  0xf0   :  { %972 = vmatmul.msk.bf16.vlgmr.msrb.gmra.mxu3 %vm69_vm0, %v1171_v28 }
  0xf6   :  { %970 = vmatmul.msk.bf16.vlgmr.msrb.gmra.mxu1 %vm69_vm0, %v1185_v38 }
  0xfb   :  { %v323_v17 = vpop.f32.mrf.mxu3 }
  0xfe   :  { %971 = vmatmul.msk.bf16.vlgmr.msrb.gmra.mxu2 %vm69_vm0, %v1148_v22  ;;  %973 = vmatmul.msk.bf16.vlgmr.msra.gmra.mxu0 %vm69_vm0, %v1191_v43 }
 0x100   :  { %976 = vmatmul.msk.bf16.vlgmr.msra.gmra.mxu3 %vm69_vm0, %v1199_v50 }
 0x103   :  { %v325_v25 = vpop.f32.mrf.mxu3 }
 0x106   :  { %974 = vmatmul.msk.bf16.vlgmr.msra.gmra.mxu1 %vm69_vm0, %v1197_v49 }
 0x10e   :  { %975 = vmatmul.msk.bf16.vlgmr.msra.gmra.mxu2 %vm69_vm0, %v1178_v31 }
 0x111   :  { %v145_v18 = vpop.f32.mrf.mxu2 }
 0x112   :  { %v150_v20 = vadd.f32 %v145_v18, %v111_v7 }
 0x113   :  { %v253_v21 = vpop.f32.mrf.mxu1 }
 0x114   :  { %v186_v22 = vadd.f32 %v181_v11, %v150_v20 }
 0x116   :  { %v222_v23 = vadd.f32 %v217_v15, %v186_v22 }
 0x118   :  { %v258_v24 = vadd.f32 %v253_v21, %v222_v23 }
 0x119   :  { %v147_v26 = vpop.f32.mrf.mxu2 }
 0x11a   :  { %v151_v27 = vadd.f32 %v147_v26, %v113_v10 }
 0x11b   :  { %v255_v28 = vpop.f32.mrf.mxu1  ;;  %v357_v29 = vpop.f32.mrf.mxu0 }
 0x11c   :  { %v187_v30 = vadd.f32 %v183_v12, %v151_v27 }
 0x11e   :  { %v223_v32 = vadd.f32 %v219_v19, %v187_v30 }
 0x120   :  { %v259_v33 = vadd.f32 %v255_v28, %v223_v32 }
 0x121   :  { %v287_v34 = vpop.f32.mrf.mxu2 }
 0x122   :  { %v292_v35 = vadd.f32 %v287_v34, %v258_v24  ;;  %v407_v36 = vpop.f32.mrf.mxu3 }
 0x123   :  { %v373_v31 = vpop.f32.mrf.mxu1  ;;  %v359_v37 = vpop.f32.mrf.mxu0 }
 0x124   :  { %v328_v38 = vadd.f32 %v323_v17, %v292_v35 }
 0x126   :  { %v1278_v39 = vadd.f32 %v357_v29, %v328_v38 }
 0x129   :  { %v289_v40 = vpop.f32.mrf.mxu2 }
 0x12a   :  { %v293_v41 = vadd.f32 %v289_v40, %v259_v33  ;;  %v409_v42 = vpop.f32.mrf.mxu3 }
 0x12b   :  { %v375_v43 = vpop.f32.mrf.mxu1  ;;  %v423_v44 = vpop.f32.mrf.mxu0 }
 0x12c   :  { %v329_v45 = vadd.f32 %v325_v25, %v293_v41 }
 0x12e   :  { %v1280_v46 = vadd.f32 %v359_v37, %v329_v45 }
 0x131   :  { %v387_v47 = vpop.f32.mrf.mxu2 }
 0x132   :  { %v388_v48 = vadd.f32 %v387_v47, %v373_v31  ;;  %v480_v49 = vpop.f32.mrf.mxu3 }
 0x133   :  { %v439_v50 = vpop.f32.mrf.mxu1  ;;  %v425_v51 = vpop.f32.mrf.mxu0 }
 0x134   :  { %v412_v52 = vadd.f32 %v407_v36, %v388_v48 }
 0x136   :  { %v428_v53 = vadd.f32 %v423_v44, %v412_v52 }
 0x138   :  { %v444_v54 = vadd.f32 %v439_v50, %v428_v53 }
 0x139   :  { %v389_v55 = vpop.f32.mrf.mxu2 }
 0x13a   :  { %v390_v56 = vadd.f32 %v389_v55, %v375_v43  ;;  %v482_v57 = vpop.f32.mrf.mxu3 }
 0x13b   :  { %v441_v58 = vpop.f32.mrf.mxu1  ;;  %v496_v59 = vpop.f32.mrf.mxu0 }
 0x13c   :  { %v413_v60 = vadd.f32 %v409_v42, %v390_v56 }
 0x13e   :  { %v429_v61 = vadd.f32 %v425_v51, %v413_v60 }
 0x140   :  { %v445_v62 = vadd.f32 %v441_v58, %v429_v61 }
 0x141   :  { %v464_v63 = vpop.f32.mrf.mxu2 }
 0x142   :  { %v469_v0 = vadd.f32 %v464_v63, %v444_v54  ;;  %v550_v1 = vpop.f32.mrf.mxu3 }
 0x143   :  { %v518_v2 = vpop.f32.mrf.mxu1  ;;  %v498_v3 = vpop.f32.mrf.mxu0 }
 0x144   :  { %v485_v4 = vadd.f32 %v480_v49, %v469_v0 }
 0x146   :  { %v501_v5 = vadd.f32 %v496_v59, %v485_v4 }
 0x148   :  { %v1282_v6 = vadd.f32 %v518_v2, %v501_v5 }
 0x149   :  { %v466_v7 = vpop.f32.mrf.mxu2 }
 0x14a   :  { %v525_v8 = vmax.f32 %v1278_v39, %v1282_v6  ;;  %v470_v9 = vadd.f32 %v466_v7, %v445_v62  ;;  %v552_v11 = vpop.f32.mrf.mxu3  ;;  %v845_v6 = vpop.permute.xlu1 %844 }
 0x14b   :  { %v520_v10 = vpop.f32.mrf.mxu1  ;;  %v564_v13 = vpop.f32.mrf.mxu0 }
 0x14c   :  { %v486_v12 = vadd.f32 %v482_v57, %v470_v9 }
 0x14e   :  { %v502_v14 = vadd.f32 %v498_v3, %v486_v12 }
 0x150   :  { %v1286_v15 = vadd.f32 %v520_v10, %v502_v14 }
 0x151   :  { %v536_v16 = vpop.f32.mrf.mxu2 }
 0x152   :  { %v526_v17 = vmax.f32 %v1280_v46, %v1286_v15  ;;  %v612_v19 = vpop.f32.mrf.mxu3  ;;  %v551_v35 = vadd.f32 %v550_v1, %v536_v16 }
 0x153   :  { %v580_v18 = vpop.f32.mrf.mxu1  ;;  %v566_v20 = vpop.f32.mrf.mxu0 }
 0x154   :  { %v569_v37 = vadd.f32 %v564_v13, %v551_v35 }
 0x156   :  { %v585_v42 = vadd.f32 %v580_v18, %v569_v37  ;;  %v840_v18 = vpop.permute.xlu0 %839 }
 0x159   :  { %v538_v21 = vpop.f32.mrf.mxu2 }
 0x15a   :  { %v614_v23 = vpop.f32.mrf.mxu3  ;;  %v553_v43 = vadd.f32 %v552_v11, %v538_v21 }
 0x15b   :  { %v582_v22 = vpop.f32.mrf.mxu1  ;;  %v634_v24 = vpop.f32.mrf.mxu0 }
 0x15c   :  { %v570_v49 = vadd.f32 %v566_v20, %v553_v43 }
 0x15e   :  { %v586_v54 = vadd.f32 %v582_v22, %v570_v49 }
 0x161   :  { %v596_v25 = vpop.f32.mrf.mxu2 }
 0x162   :  { %v601_v45 = vadd.f32 %v596_v25, %v585_v42 }
 0x163   :  { %v656_v26 = vpop.f32.mrf.mxu1  ;;  %v696_v28 = vpop.f32.mrf.mxu3 }
 0x164   :  { %v636_v29 = vpop.f32.mrf.mxu0  ;;  %v617_v51 = vadd.f32 %v612_v19, %v601_v45 }
 0x166   :  { %v639_v58 = vadd.f32 %v634_v24, %v617_v51 }
 0x168   :  { %v661_v0 = vadd.f32 %v656_v26, %v639_v58 }
 0x169   :  { %v598_v27 = vpop.f32.mrf.mxu2 }
 0x16a   :  { %v602_v59 = vadd.f32 %v598_v27, %v586_v54 }
 0x16b   :  { %v658_v30 = vpop.f32.mrf.mxu1  ;;  %v698_v33 = vpop.f32.mrf.mxu3 }
 0x16c   :  { %v710_v34 = vpop.f32.mrf.mxu0  ;;  %v618_v1 = vadd.f32 %v614_v23, %v602_v59 }
 0x16d   :  { %v711_v40 = vadd.f32 %v710_v34, %v696_v28 }
 0x16e   :  { %v640_v10 = vadd.f32 %v636_v29, %v618_v1 }
 0x170   :  { %v662_v19 = vadd.f32 %v658_v30, %v640_v10 }
 0x171   :  { %v678_v32 = vpop.f32.mrf.mxu2 }
 0x172   :  { %v683_v2 = vadd.f32 %v678_v32, %v661_v0 }
 0x173   :  { %v724_v36 = vpop.f32.mrf.mxu1  ;;  %v756_v38 = vpop.f32.mrf.mxu3 }
 0x174   :  { %v712_v41 = vpop.f32.mrf.mxu0  ;;  %v729_v47 = vadd.f32 %v724_v36, %v711_v40  ;;  %v685_v12 = vmax.f32 %v525_v8, %v683_v2 }
 0x175   :  { %v713_v55 = vadd.f32 %v712_v41, %v698_v33 }
 0x179   :  { %v680_v31 = vpop.f32.mrf.mxu2 }
 0x17a   :  { %v684_v21 = vadd.f32 %v680_v31, %v662_v19 }
 0x17b   :  { %v726_v48 = vpop.f32.mrf.mxu1  ;;  %v758_v53 = vpop.f32.mrf.mxu3 }
 0x17c   :  { %v772_v52 = vpop.f32.mrf.mxu0  ;;  %v730_v60 = vadd.f32 %v726_v48, %v713_v55  ;;  %v686_v28 = vmax.f32 %v526_v17, %v684_v21 }
 0x181   :  { %v740_v44 = vpop.f32.mrf.mxu2 }
 0x182   :  { %v745_v50 = vadd.f32 %v740_v44, %v729_v47 }
 0x183   :  { %v788_v61 = vpop.f32.mrf.mxu1  ;;  %v826_v7 = vpop.f32.mrf.mxu3 }
 0x184   :  { %v761_v56 = vadd.f32 %v756_v38, %v745_v50  ;;  %v774_v5 = vpop.f32.mrf.mxu0 }
 0x186   :  { %v777_v62 = vadd.f32 %v772_v52, %v761_v56 }
 0x188   :  { %v793_v3 = vadd.f32 %v788_v61, %v777_v62 }
 0x189   :  { %v742_v57 = vpop.f32.mrf.mxu2 }
 0x18a   :  { %v746_v63 = vadd.f32 %v742_v57, %v730_v60 }
 0x18b   :  { %v790_v16 = vpop.f32.mrf.mxu1  ;;  %v828_v27 = vpop.f32.mrf.mxu3 }
 0x18c   :  { %v762_v4 = vadd.f32 %v758_v53, %v746_v63 }
 0x18e   :  { %v778_v13 = vadd.f32 %v774_v5, %v762_v4 }
 0x190   :  { %v794_v22 = vadd.f32 %v790_v16, %v778_v13 }
 0x191   :  { %v804_v9 = vpop.f32.mrf.mxu2 }
 0x192   :  { %v809_v11 = vadd.f32 %v804_v9, %v793_v3 }
 0x194   :  { %v831_v14 = vadd.f32 %v826_v7, %v809_v11 }
 0x196   :  { %v833_v20 = vmax.f32 %v685_v12, %v831_v14 }
 0x198   :  { %v847_v23 = vadd.f32 %v840_v18, %v833_v20 }
 0x199   :  { %v806_v24 = vpop.f32.mrf.mxu2 }
 0x19a   :  { %v849_v25 = vmax.f32 %v847_v23, 0.0  ;;  %v810_v26 = vadd.f32 %v806_v24, %v794_v22 }
 0x19c   :  { %851 = vst [vmem:[#allocation7] sm:$0xff] %v849_v25  ;;  %v832_v39 = vadd.f32 %v828_v27, %v810_v26 }
 0x19e   :  { %v834_v8 = vmax.f32 %v686_v28, %v832_v39 }
 0x1a0   :  { %v848_v29 = vadd.f32 %v845_v6, %v834_v8 }
 0x1a2   :  { %v850_v30 = vmax.f32 %v848_v29, 0.0 }
 0x1a4   :  { %852 = vst [vmem:[#allocation7 + $0x8] sm:$0xff] %v850_v30 }
 0x1a5   :  { %865 = dma.vmem_to_hbm [thread:$0]  %s858_s4, 256, %s860_s7, [#allocation4], %s1086_s20, %s1086_s20, %s1087_s21  }
 0x1a6   :  { %1083 = dma.done.wait [#allocation4], 256  }
 0x1a7   :  { %1084 = vsyncadd [#allocation4], 4294967040 }
 0x1a8   :  { %870 = vsyncpa [#allocation3], 1 }
 0x1a9   :  { %871 = vsyncpa [#allocation6], 1 }
 0x1aa   :  { %872 = vsyncpa [#allocation4], 1 }

</bundles_post_ra>
